<compile_context>
chip_gen: v5e
topology: v5e:2x2
jax: 0.10.0
libtpu: 0.0.40
codegen_flags: <defaults>
</compile_context>

<pallas_src>
import math
import jax
import jax.numpy as jnp
from jax import lax
from jax.experimental import pallas as pl
from jax.experimental.pallas import tpu as pltpu


def _round_up(a, b):
    return (a + b - 1) // b * b


def _vmem_capacity_bytes():
    try:
        return int(pltpu.get_tpu_info().vmem_capacity_bytes)
    except Exception:
        return 64 * 1024 * 1024        # conservative floor (v7x per-TC VMEM)


def _choose_tiles(n_pad, dbytes, work_budget_bytes):
    """Pick (TM, TK) as divisors of n_pad (multiples of 128) that fit VMEM."""
    divisors = [d for d in range(128, n_pad + 1, 128) if n_pad % d == 0]
    # >= 2 row tiles whenever possible so v7x's two TensorCores both engage.
    tm_cands = [d for d in divisors if d <= 512 and n_pad // d >= 2]
    TM = max(tm_cands) if tm_cands else min(divisors)

    def working_set(tk):
        streams = 3 * 2 * TM * tk * dbytes    # mx, mx^T-view, adj (double-buffered)
        sup = 2 * n_pad * 64 * dbytes         # resident support
        acc = TM * 64 * 4                     # f32 accumulators
        outb = 2 * TM * 128 * 4               # double-buffered output tile
        return streams + sup + acc + outb

    tk_cands = [d for d in divisors if working_set(d) <= work_budget_bytes]
    TK = max(tk_cands) if tk_cands else min(divisors)
    return TM, TK


# ---------------- kernel A: fused projection  sup = x @ [W_out | W_in | W_self] ----------------
def proj_kernel(x_ref, w_ref, sup_ref):
    sup_ref[...] = jnp.dot(
        x_ref[...], w_ref[...], preferred_element_type=jnp.float32
    ).astype(sup_ref.dtype)


# ---------------- kernel B: tiled A@S aggregation + ReLU + MLP tail ----------------
def agg_kernel(mx_ref, mxkt_ref, adj_ref, sup_ref,
               b_out_ref, b_in_ref, b_self_ref,
               l1_ref, b1_ref, l2_ref, b2_ref, l3_ref, b3_ref,
               o_ref, acc_out, acc_in, acc_self):
    f32 = jnp.float32
    k = pl.program_id(1)
    tk = mx_ref.shape[1]

    @pl.when(k == 0)
    def _init():
        acc_out[...] = jnp.zeros_like(acc_out)
        acc_in[...] = jnp.zeros_like(acc_in)
        acc_self[...] = jnp.zeros_like(acc_self)

    # sup is fully VMEM-resident; slice the current K window in-kernel.
    off = pl.multiple_of(k * tk, 128)
    sup = sup_ref[pl.ds(off, tk), :]                               # (TK, 64)

    acc_out[...] += jnp.dot(mx_ref[...], sup[:, 0:16], preferred_element_type=f32)
    # in-branch: (mx.T)[i,k] @ sup  ==  contract dim 0 of the (TK, TM) mx view
    # (LHS-transposed MXU; no materialized transpose in HBM).
    acc_in[...] += lax.dot_general(
        mxkt_ref[...], sup[:, 16:32],
        dimension_numbers=(((0,), (0,)), ((), ())),
        preferred_element_type=f32)
    acc_self[...] += jnp.dot(adj_ref[...], sup[:, 32:64], preferred_element_type=f32)

    @pl.when(k == pl.num_programs(1) - 1)
    def _finalize():
        cd = l1_ref.dtype
        # bias + ReLU per branch (== ReLU after concat, elementwise)
        out_f = jnp.maximum(acc_out[...] + b_out_ref[...], 0.0).astype(cd)
        in_f = jnp.maximum(acc_in[...] + b_in_ref[...], 0.0).astype(cd)
        self_f = jnp.maximum(acc_self[...] + b_self_ref[...], 0.0).astype(cd)
        # concat([out, in, self], 1) @ L1  ==  sum of row-sliced matmuls of L1
        l1 = l1_ref[...]
        h = (jnp.dot(out_f, l1[0:16, :], preferred_element_type=f32)
             + jnp.dot(in_f, l1[16:32, :], preferred_element_type=f32)
             + jnp.dot(self_f, l1[32:64, :], preferred_element_type=f32)
             + b1_ref[...])
        h = jnp.dot(h.astype(cd), l2_ref[...], preferred_element_type=f32) + b2_ref[...]
        y = jnp.dot(h.astype(cd), l3_ref[...], preferred_element_type=f32) + b3_ref[...]
        o_ref[...] = y.astype(o_ref.dtype)


# ---------------- host-side: one-time preprocessing (hoisted out of forward) ----------------
def preprocess_inputs(x, mx, adj, *, compute_dtype=jnp.bfloat16):
    """One-time pad+cast of the HBM-dominant operands.  Adjacency is typically
    static across layers / epochs, so call this ONCE and reuse the result."""
    n, nfeat = x.shape
    n_pad = _round_up(max(n, 128), 128)          # layout floor only (not a TK multiple)

    def pad2(a, r, c):
        return jnp.pad(a, ((0, r - a.shape[0]), (0, c - a.shape[1])))

    return {
        "n": n,
        "n_pad": n_pad,
        "compute_dtype": compute_dtype,
        "x": pad2(x.astype(compute_dtype), n_pad, nfeat),
        "mx": pad2(mx.astype(compute_dtype), n_pad, n_pad),
        "adj": pad2(adj.astype(compute_dtype), n_pad, n_pad),
    }


def hgcn_adj_forward_padded(pre, params):
    """HGCNadj.forward (eval mode) on pre-padded / pre-cast inputs."""
    n, n_pad, cd = pre["n"], pre["n_pad"], pre["compute_dtype"]
    x_p, mx_p, adj_p = pre["x"], pre["mx"], pre["adj"]
    nfeat = x_p.shape[1]
    nout = params["l3"].shape[1]
    f32 = jnp.float32
    dbytes = jnp.dtype(cd).itemsize
    nout_pad = 128                                # lane-dense output writeback

    # Generation-aware VMEM budget: ~96 MiB on v5e/v6e (128 MiB), ~48 MiB on v7x (64 MiB).
    vmem_cap = _vmem_capacity_bytes()
    vmem_limit = min((vmem_cap * 3) // 4, 112 * 1024 * 1024)
    TM, TK = _choose_tiles(n_pad, dbytes, (vmem_limit * 4) // 5)

    # Small weights / biases (tiny: cast once here, negligible traffic).
    w64 = jnp.concatenate([params["w_out"], params["w_in"], params["w_self"]],
                          axis=1).astype(cd)                       # (nfeat, 64)
    l1 = params["l1"].astype(cd)
    l2 = params["l2"].astype(cd)
    l3_p = jnp.pad(params["l3"], ((0, 0), (0, nout_pad - nout))).astype(cd)
    b3_p = jnp.pad(params["b3"], ((0, 0), (0, nout_pad - nout)))

    # ---- kernel A: support projection ----
    sup = pl.pallas_call(
        proj_kernel,
        out_shape=jax.ShapeDtypeStruct((n_pad, 64), cd),
        grid_spec=pltpu.PrefetchScalarGridSpec(
            num_scalar_prefetch=0,
            grid=(n_pad // TK,),
            in_specs=[pl.BlockSpec((TK, nfeat), lambda s: (s, 0)),
                      pl.BlockSpec((nfeat, 64), lambda s: (0, 0))],
            out_specs=pl.BlockSpec((TK, 64), lambda s: (s, 0)),
        ),
        compiler_params=pltpu.CompilerParams(
            dimension_semantics=("parallel",),
            vmem_limit_bytes=vmem_limit),
    )(x_p, w64)

    # ---- kernel B: tiled aggregation + ReLU + MLP tail ----
    grid = (n_pad // TM, n_pad // TK)
    cost = pl.CostEstimate(
        flops=int(2 * n_pad * n_pad * 64
                  + 2 * n_pad * (64 * 32 + 32 * 16 + 16 * nout_pad)),
        transcendentals=0,
        bytes_accessed=int(3 * n_pad * n_pad * dbytes      # mx (two views) + adj
                           + n_pad * 64 * dbytes           # resident sup
                           + n_pad * nout_pad * 4),        # output
    )

    tile = pl.BlockSpec((TM, TK), lambda i, k: (i, k))
    tile_t = pl.BlockSpec((TK, TM), lambda i, k: (k, i))    # mx^T view: no HBM transpose

    def full(shape):
        return pl.BlockSpec(shape, lambda i, k: (0, 0))

    out_pad = pl.pallas_call(
        agg_kernel,
        out_shape=jax.ShapeDtypeStruct((n_pad, nout_pad), f32),
        grid_spec=pltpu.PrefetchScalarGridSpec(
            num_scalar_prefetch=0,
            grid=grid,
            in_specs=[tile, tile_t, tile,
                      full((n_pad, 64)),                    # sup: VMEM-resident
                      full((1, 16)), full((1, 16)), full((1, 32)),
                      full((64, 32)), full((1, 32)),
                      full((32, 16)), full((1, 16)),
                      full((16, nout_pad)), full((1, nout_pad))],
            out_specs=pl.BlockSpec((TM, nout_pad), lambda i, k: (i, 0)),
            scratch_shapes=[pltpu.VMEM((TM, 16), f32),
                            pltpu.VMEM((TM, 16), f32),
                            pltpu.VMEM((TM, 32), f32)],
        ),
        compiler_params=pltpu.CompilerParams(
            dimension_semantics=("parallel", "arbitrary"),  # rows shard across v7x TCs
            vmem_limit_bytes=vmem_limit),
        cost_estimate=cost,
    )(mx_p, mx_p, adj_p, sup,
      params["b_out"], params["b_in"], params["b_self"],
      l1, params["b1"], l2, params["b2"], l3_p, b3_p)

    # Padded rows [n:n_pad] hold bias+ReLU+MLP of zero accumulators (garbage) and
    # are sliced off here; do not alias the padded output buffer in place.
    return out_pad[:n, :nout]


def hgcn_adj_forward(x, mx, adj, params, *, compute_dtype=jnp.bfloat16):
    """Convenience wrapper (preprocess + forward).  For repeated calls, hoist
    preprocess_inputs() out of the hot path and call hgcn_adj_forward_padded."""
    pre = preprocess_inputs(x, mx, adj, compute_dtype=compute_dtype)
    return hgcn_adj_forward_padded(pre, params)


def init_params(key, nfeat, nout):
    """Deterministic uniform(-stdv, stdv) init mirroring the PyTorch module."""
    def uni(k, shape, stdv):
        return jax.random.uniform(k, shape, jnp.float32, -stdv, stdv)

    keys = jax.random.split(key, 12)
    s16 = 1.0 / math.sqrt(16)
    s32 = 1.0 / math.sqrt(32)
    sn = 1.0 / math.sqrt(nout)
    return {
        "w_out":  uni(keys[0], (nfeat, 16), s16), "b_out": uni(keys[1], (1, 16), s16),
        "w_in":   uni(keys[2], (nfeat, 16), s16), "b_in":  uni(keys[3], (1, 16), s16),
        "w_self": uni(keys[4], (nfeat, 32), s32), "b_self": uni(keys[5], (1, 32), s32),
        "l1": uni(keys[6], (64, 32), s32), "b1": uni(keys[7], (1, 32), s32),
        "l2": uni(keys[8], (32, 16), s16), "b2": uni(keys[9], (1, 16), s16),
        "l3": uni(keys[10], (16, nout), sn), "b3": uni(keys[11], (1, nout), sn),
    }


def reference_forward(x, mx, adj, p, compute_dtype=jnp.float32):
    """Pure-JAX reference mirroring the kernel's precision policy
    (compute_dtype operands, f32 accumulation)."""
    f32 = jnp.float32
    cd = compute_dtype
    w64 = jnp.concatenate([p["w_out"], p["w_in"], p["w_self"]], axis=1).astype(cd)
    sup = jnp.dot(x.astype(cd), w64, preferred_element_type=f32).astype(cd)
    mxc, adjc = mx.astype(cd), adj.astype(cd)
    out_feat = jax.nn.relu(jnp.dot(mxc, sup[:, 0:16], preferred_element_type=f32) + p["b_out"])
    in_feat = jax.nn.relu(jnp.dot(mxc.T, sup[:, 16:32], preferred_element_type=f32) + p["b_in"])
    self_ft = jax.nn.relu(jnp.dot(adjc, sup[:, 32:64], preferred_element_type=f32) + p["b_self"])
    h = jnp.concatenate([out_feat, in_feat, self_ft], axis=1).astype(cd)
    h = jnp.dot(h, p["l1"].astype(cd), preferred_element_type=f32) + p["b1"]
    h = jnp.dot(h.astype(cd), p["l2"].astype(cd), preferred_element_type=f32) + p["b2"]
    return jnp.dot(h.astype(cd), p["l3"].astype(cd), preferred_element_type=f32) + p["b3"]


if __name__ == "__main__":
    key = jax.random.PRNGKey(0)

    # ---- small-shape test (matches the module: nfeat=32, nout=8, N=16 nodes) ----
    N, NFEAT, NOUT = 16, 32, 8
    kx, kmx, kadj, kp, key = jax.random.split(key, 5)
    x = jax.random.normal(kx, (N, NFEAT), jnp.float32)
    mx = jax.random.normal(kmx, (N, N), jnp.float32)
    adj = jax.random.normal(kadj, (N, N), jnp.float32)
    params = init_params(kp, NFEAT, NOUT)

    pre = preprocess_inputs(x, mx, adj)              # one-time pad/cast (hoisted)
    y = jax.block_until_ready(hgcn_adj_forward_padded(pre, params))
    y_ref = reference_forward(x, mx, adj, params, compute_dtype=jnp.bfloat16)
    assert y.shape == (N, NOUT)
    assert jnp.allclose(y, y_ref, atol=5e-2, rtol=5e-2), "small-case mismatch vs reference"

    # ---- multi-tile test: exercises the (row, contraction) grid + accumulators ----
    N2, NFEAT2, NOUT2 = 1024, 48, 8
    kx2, kmx2, kadj2, kp2 = jax.random.split(key, 4)
    x2 = jax.random.normal(kx2, (N2, NFEAT2), jnp.float32)
    mx2 = jax.random.normal(kmx2, (N2, N2), jnp.float32)
    adj2 = jax.random.normal(kadj2, (N2, N2), jnp.float32)
    params2 = init_params(kp2, NFEAT2, NOUT2)

    pre2 = preprocess_inputs(x2, mx2, adj2)          # one-time pad/cast (hoisted)
    y2 = jax.block_until_ready(hgcn_adj_forward_padded(pre2, params2))
    y2_ref = reference_forward(x2, mx2, adj2, params2, compute_dtype=jnp.bfloat16)
    assert y2.shape == (N2, NOUT2)
    assert jnp.allclose(y2, y2_ref, atol=2e-1, rtol=5e-2), "tiled-case mismatch vs reference"

    print("KERNEL_OK")
</pallas_src>

<mosaic_0001>
module attributes {stable_mosaic.version = 11 : i64} {
  func.func @proj_kernel(%arg0: i32, %arg1: memref<128x32xbf16, #tpu.memory_space<vmem>>, %arg2: memref<32x64xbf16, #tpu.memory_space<vmem>>, %arg3: memref<128x64xbf16, #tpu.memory_space<vmem>>) attributes {dimension_semantics = [#tpu.dimension_semantics<parallel>], iteration_bounds = array<i64: 1>, scalar_prefetch = 0 : i64, scratch_operands = 0 : i64, tpu.core_type = #tpu.core_type<tc>, window_params = [{transform_indices = @transform_0, window_bounds = array<i64: 128, 32>}, {pipeline_mode = #tpu.pipeline_mode<synchronous>, transform_indices = @transform_1, window_bounds = array<i64: 32, 64>}, {transform_indices = @transform_2, window_bounds = array<i64: 128, 64>}]} {
    %c0 = arith.constant 0 : index
    %c0_0 = arith.constant 0 : index
    %0 = vector.load %arg1[%c0, %c0_0] : memref<128x32xbf16, #tpu.memory_space<vmem>>, vector<128x32xbf16>
    %c0_1 = arith.constant 0 : index
    %c0_2 = arith.constant 0 : index
    %1 = vector.load %arg2[%c0_1, %c0_2] : memref<32x64xbf16, #tpu.memory_space<vmem>>, vector<32x64xbf16>
    %cst = arith.constant dense<0.000000e+00> : vector<128x64xf32>
    %2 = tpu.matmul %0, %1, %cst {dimension_numbers = #tpu.dot_dimension_numbers<[1], [0], [0], [1], [0, 0, 1, 1], [], []>} : vector<128x32xbf16>, vector<32x64xbf16>, vector<128x64xf32> -> vector<128x64xf32>
    %3 = arith.truncf %2 : vector<128x64xf32> to vector<128x64xbf16>
    %c0_3 = arith.constant 0 : index
    %c0_4 = arith.constant 0 : index
    %4 = vector.load %arg3[%c0_3, %c0_4] : memref<128x64xbf16, #tpu.memory_space<vmem>>, vector<128x64xbf16>
    tpu.vector_store %arg3[%c0_3, %c0_4], %3 {strides = array<i32>} : memref<128x64xbf16, #tpu.memory_space<vmem>>, vector<128x64xbf16>,
    return
  }
  func.func @transform_0(%arg0: i32) -> (i32, i32) {
    %c0_i32 = arith.constant 0 : i32
    %c0_i32_0 = arith.constant 0 : i32
    return %arg0, %c0_i32 : i32, i32
  }
  func.func @transform_1(%arg0: i32) -> (i32, i32) {
    %c0_i32 = arith.constant 0 : i32
    %c0_i32_0 = arith.constant 0 : i32
    %c0_i32_1 = arith.constant 0 : i32
    return %c0_i32, %c0_i32_0 : i32, i32
  }
  func.func @transform_2(%arg0: i32) -> (i32, i32) {
    %c0_i32 = arith.constant 0 : i32
    %c0_i32_0 = arith.constant 0 : i32
    return %arg0, %c0_i32 : i32, i32
  }
}

</mosaic_0001>

<bundles_post_ra>
// kernel: tpu_custom_call.1
= control target key start
LH: loop header
LB: loop body
LE: loop exit
PB: predicated region body
PF: predicated region fallthrough
CT: control target
= control target key end

     0   :  { %vm84_vm0 = vcmask 261120   ;;  %vm174_vm1 = vcmask 519168   ;;  %s376_s1 = inlined_call_operand.vmem [shape: bf16[32,64], index: 1, kind: input, shape index: {}]   ;;  %s377_s0 = inlined_call_operand.vmem [shape: bf16[128,32], index: 0, kind: input, shape index: {}]   ;;  %s378_s2 = inlined_call_operand.vmem [shape: bf16[128,64], index: 2, kind: output, shape index: {}]  }
   0x1   :  { %v252_v0 = vld [vmem:[%s376_s1 + $0x8] sm:$0xff]  ;;  %v251_v1 = vld [vmem:[%s376_s1] sm:$0xff]  ;;  %v245_v3 = vld [vmem:[%s377_s0 + $0x10] sm:$0xff] }
   0x2   :  { %115 = vmatpush.bf16.msra.mxu0 %v252_v0  ;;  %253 = vmatpush.bf16.msra.mxu1 %v252_v0  ;;  %v243_v2 = vld [vmem:[%s377_s0] sm:$0xff]  ;;  %v249_v5 = vld [vmem:[%s377_s0 + $0x30] sm:$0xff]  ;;  %v244_v6 = vld [vmem:[%s377_s0 + $0x8] sm:$0xff] }
   0x3   :  { %254 = vmatpush.bf16.msra.mxu2 %v252_v0  ;;  %255 = vmatpush.bf16.msra.mxu3 %v252_v0  ;;  %v247_v4 = vld [vmem:[%s377_s0 + $0x20] sm:$0xff]  ;;  %v246_v7 = vld [vmem:[%s377_s0 + $0x18] sm:$0xff]  ;;  %v248_v8 = vld [vmem:[%s377_s0 + $0x28] sm:$0xff] }
   0x4   :  { %v250_v9 = vld [vmem:[%s377_s0 + $0x38] sm:$0xff] }
   0x6   :  { %116 = vmatpush.bf16.msra.mxu0 %v251_v1  ;;  %256 = vmatpush.bf16.msra.mxu1 %v251_v1 }
   0x7   :  { %257 = vmatpush.bf16.msra.mxu2 %v251_v1  ;;  %258 = vmatpush.bf16.msra.mxu3 %v251_v1 }
   0x9   :  { %235 = vmatmul.msk.bf16.vlgmr.msra.gmra.mxu0 %vm84_vm0, %v243_v2  ;;  %237 = vmatmul.msk.bf16.vlgmr.msra.gmra.mxu1 %vm84_vm0, %v245_v3 }
   0xa   :  { %239 = vmatmul.msk.bf16.vlgmr.msra.gmra.mxu2 %vm84_vm0, %v247_v4  ;;  %241 = vmatmul.msk.bf16.vlgmr.msra.gmra.mxu3 %vm84_vm0, %v249_v5 }
  0x19   :  { %236 = vmatmul.msk.bf16.gmra.mxu0 %vm84_vm0, %v244_v6  ;;  %238 = vmatmul.msk.bf16.gmra.mxu1 %vm84_vm0, %v246_v7 }
  0x1a   :  { %240 = vmatmul.msk.bf16.gmra.mxu2 %vm84_vm0, %v248_v8  ;;  %242 = vmatmul.msk.bf16.gmra.mxu3 %vm84_vm0, %v250_v9 }
  0x86   :  { %v118_v10 = vpop.f32.mrf.mxu0  ;;  %v128_v11 = vpop.f32.mrf.mxu1 }
  0x87   :  { %v158_v12 = vpack.c.bf16 %v118_v10, %v118_v10  ;;  %v162_v13 = vpack.c.bf16 %v128_v11, %v128_v11 }
  0x89   :  { %175 = vst.msk [vmem:[%s378_s2] sm:$0xf] %vm174_vm1, %v158_v12 }
  0x8a   :  { %179 = vst.msk [vmem:[%s378_s2 + $0x10] sm:$0xf] %vm174_vm1, %v162_v13 }
  0x8d   :  { %v138_v14 = vpop.f32.mrf.mxu2  ;;  %v148_v15 = vpop.f32.mrf.mxu3 }
  0x8e   :  { %v166_v16 = vpack.c.bf16 %v138_v14, %v138_v14  ;;  %v170_v17 = vpack.c.bf16 %v148_v15, %v148_v15  ;;  %v120_v18 = vpop.f32.mrf.mxu0  ;;  %v130_v19 = vpop.f32.mrf.mxu1 }
  0x8f   :  { %v159_v20 = vpack.c.bf16 %v120_v18, %v120_v18  ;;  %v163_v21 = vpack.c.bf16 %v130_v19, %v130_v19 }
  0x90   :  { %183 = vst.msk [vmem:[%s378_s2 + $0x20] sm:$0xf] %vm174_vm1, %v166_v16 }
  0x91   :  { %187 = vst.msk [vmem:[%s378_s2 + $0x30] sm:$0xf] %vm174_vm1, %v170_v17 }
  0x92   :  { %176 = vst.msk [vmem:[%s378_s2 + $0x4] sm:$0xf] %vm174_vm1, %v159_v20 }
  0x93   :  { %180 = vst.msk [vmem:[%s378_s2 + $0x14] sm:$0xf] %vm174_vm1, %v163_v21 }
  0x95   :  { %v140_v22 = vpop.f32.mrf.mxu2  ;;  %v150_v23 = vpop.f32.mrf.mxu3 }
  0x96   :  { %v167_v24 = vpack.c.bf16 %v140_v22, %v140_v22  ;;  %v171_v25 = vpack.c.bf16 %v150_v23, %v150_v23  ;;  %v123_v26 = vpop.f32.mrf.mxu0  ;;  %v133_v27 = vpop.f32.mrf.mxu1 }
  0x97   :  { %v160_v28 = vpack.c.bf16 %v123_v26, %v123_v26  ;;  %v164_v29 = vpack.c.bf16 %v133_v27, %v133_v27 }
  0x98   :  { %184 = vst.msk [vmem:[%s378_s2 + $0x24] sm:$0xf] %vm174_vm1, %v167_v24 }
  0x99   :  { %188 = vst.msk [vmem:[%s378_s2 + $0x34] sm:$0xf] %vm174_vm1, %v171_v25 }
  0x9a   :  { %177 = vst.msk [vmem:[%s378_s2 + $0x8] sm:$0xf] %vm174_vm1, %v160_v28 }
  0x9b   :  { %181 = vst.msk [vmem:[%s378_s2 + $0x18] sm:$0xf] %vm174_vm1, %v164_v29 }
  0x9d   :  { %v143_v30 = vpop.f32.mrf.mxu2  ;;  %v153_v31 = vpop.f32.mrf.mxu3 }
  0x9e   :  { %v168_v32 = vpack.c.bf16 %v143_v30, %v143_v30  ;;  %v172_v33 = vpack.c.bf16 %v153_v31, %v153_v31  ;;  %v125_v34 = vpop.f32.mrf.mxu0  ;;  %v135_v35 = vpop.f32.mrf.mxu1 }
  0x9f   :  { %v161_v36 = vpack.c.bf16 %v125_v34, %v125_v34  ;;  %v165_v37 = vpack.c.bf16 %v135_v35, %v135_v35 }
  0xa0   :  { %185 = vst.msk [vmem:[%s378_s2 + $0x28] sm:$0xf] %vm174_vm1, %v168_v32 }
  0xa1   :  { %189 = vst.msk [vmem:[%s378_s2 + $0x38] sm:$0xf] %vm174_vm1, %v172_v33 }
  0xa2   :  { %178 = vst.msk [vmem:[%s378_s2 + $0xc] sm:$0xf] %vm174_vm1, %v161_v36 }
  0xa3   :  { %182 = vst.msk [vmem:[%s378_s2 + $0x1c] sm:$0xf] %vm174_vm1, %v165_v37 }
  0xa5   :  { %v145_v38 = vpop.f32.mrf.mxu2  ;;  %v155_v39 = vpop.f32.mrf.mxu3 }
  0xa6   :  { %v169_v40 = vpack.c.bf16 %v145_v38, %v145_v38  ;;  %v173_v41 = vpack.c.bf16 %v155_v39, %v155_v39 }
  0xa8   :  { %186 = vst.msk [vmem:[%s378_s2 + $0x2c] sm:$0xf] %vm174_vm1, %v169_v40 }
  0xa9   :  { %190 = vst.msk [vmem:[%s378_s2 + $0x3c] sm:$0xf] %vm174_vm1, %v173_v41 }

</bundles_post_ra>
